<compile_context>
chip_gen: v6e
topology: v6e:2x2x1
jax: 0.10.0
libtpu: 0.0.40
codegen_flags: <defaults>
</compile_context>

<pallas_src>
import functools

import jax
import jax.numpy as jnp
from jax.experimental import pallas as pl
from jax.experimental.pallas import tpu as pltpu


_LANE = 128          # lane width of a vreg
_MAX_TILE_ROWS = 1024  # cap per review: ~1-4 MiB blocks already hit ~85% of roofline


def _round_up(a, b):
    return -(-a // b) * b


def _pmdn_kernel(cfs_ref, f_ref, beta_ref, res_ref, ploss_ref, *,
                 total_rows, mask_tail):
    # cfs_ref  : SMEM (B, K)      scalar-prefetched metadata (col 0 already dropped)
    # f_ref    : VMEM (B, ts, 128) feature tile
    # beta_ref : VMEM (K, ts, 128) beta tile (K = num_metadata - 1)
    # res_ref  : VMEM (B, ts, 128) residual tile
    # ploss_ref: VMEM (1, 8, 128)  per-chunk partial sum of squares
    B, ts, L = f_ref.shape
    K = beta_ref.shape[0]

    if mask_tail:
        # Rows past total_rows on the ragged last tile are OOB garbage reads;
        # their residual writes are masked by Pallas, but the loss must be
        # masked explicitly.
        row_ids = (pl.program_id(0) * ts
                   + jax.lax.broadcasted_iota(jnp.int32, (ts, L), 0))
        valid = row_ids < total_rows

    # Load each beta tile once; reuse for every batch element (VPU-only MACs,
    # cfs scalars come from SMEM — no MXU on the critical path).
    betas = [beta_ref[m] for m in range(K)]

    acc = jnp.zeros((8, L), jnp.float32)
    for b in range(B):                               # B is tiny: static unroll
        f_r = cfs_ref[b, 0] * betas[0]
        for m in range(1, K):
            f_r = f_r + cfs_ref[b, m] * betas[m]
        r = f_ref[b] - f_r                           # fused chain, single store
        res_ref[b] = r
        r2 = r * r
        if mask_tail:
            r2 = jnp.where(valid, r2, 0.0)
        # vreg-shaped partial reduction: only VPU adds across vregs.
        acc = acc + jnp.sum(r2.reshape(ts // 8, 8, L), axis=0)
    ploss_ref[...] = acc.reshape(1, 8, L)


def pmdn_prepare_params(cfs, beta_mdn):
    """Done ONCE at parameter-setup time (outside the per-step jit).

    Drops the dead metadata column so the kernel never DMAs beta row 0
    (~1/M of beta traffic for free)."""
    return cfs[:, 1:].astype(jnp.float32), beta_mdn[1:].astype(jnp.float32)


def pmdn_forward(x, cfs_eff, beta_eff):
    """Pallas implementation of PMDNLayer.forward (use_labels=False).

    cfs_eff / beta_eff are the pre-sliced params from pmdn_prepare_params."""
    B = x.shape[0]
    F = 1
    for d in x.shape[1:]:
        F *= d
    K = beta_eff.shape[0]
    L = _LANE

    f = x.reshape(B, F).astype(jnp.float32)
    beta = beta_eff.astype(jnp.float32)
    cfs_f32 = cfs_eff.astype(jnp.float32)

    # Only the lane remainder (F % 128) ever needs a wrapper pad; for
    # F = C*H*W this is usually zero. Padded lanes are zero in both f and
    # beta, so they are inert for residual and loss.
    f_lanes = _round_up(F, L)
    lane_pad = f_lanes - F
    if lane_pad:
        f = jnp.pad(f, ((0, 0), (0, lane_pad)))
        beta = jnp.pad(beta, ((0, 0), (0, lane_pad)))
    s_raw = f_lanes // L                             # sublane rows of the slab

    # Tile rows: aim for ~8 chunks, never exceed _MAX_TILE_ROWS, multiple of 8.
    ts = min(_MAX_TILE_ROWS, max(8, _round_up(-(-s_raw // 8), 8)))
    num_chunks = -(-s_raw // ts)
    mask_tail = (num_chunks * ts) != s_raw           # ragged last tile?

    f3 = f.reshape(B, s_raw, L)                      # lane/sublane-dense slabs
    beta3 = beta.reshape(K, s_raw, L)

    # VMEM budget: ~3x the double-buffered block footprint, with headroom for
    # v7x's 64 MiB per-TC VMEM.
    block_bytes = (2 * B + K) * ts * L * 4 + 8 * L * 4
    vmem_limit = int(min(max(6 * block_bytes, 16 * 1024 * 1024),
                         48 * 1024 * 1024))

    bytes_accessed = ((2 * B + K) * s_raw * L * 4
                      + num_chunks * 8 * L * 4 + B * K * 4)
    flops = (2 * K + 3) * B * s_raw * L

    kernel = functools.partial(_pmdn_kernel, total_rows=s_raw,
                               mask_tail=mask_tail)

    residual3, ploss = pl.pallas_call(
        kernel,
        out_shape=(
            jax.ShapeDtypeStruct((B, s_raw, L), jnp.float32),
            jax.ShapeDtypeStruct((num_chunks, 8, L), jnp.float32),
        ),
        grid_spec=pltpu.PrefetchScalarGridSpec(
            num_scalar_prefetch=1,                   # cfs -> SMEM
            grid=(num_chunks,),
            in_specs=[
                pl.BlockSpec((B, ts, L), lambda j, cfs: (0, j, 0)),   # f tile
                pl.BlockSpec((K, ts, L), lambda j, cfs: (0, j, 0)),   # beta tile
            ],
            out_specs=(
                pl.BlockSpec((B, ts, L), lambda j, cfs: (0, j, 0)),   # residual
                pl.BlockSpec((1, 8, L), lambda j, cfs: (j, 0, 0)),    # loss part
            ),
        ),
        compiler_params=pltpu.CompilerParams(
            dimension_semantics=("parallel",),        # megacore-shardable
            vmem_limit_bytes=vmem_limit,
        ),
        cost_estimate=pl.CostEstimate(
            flops=flops, transcendentals=0, bytes_accessed=bytes_accessed),
    )(cfs_f32, f3, beta3)

    residual = residual3.reshape(B, f_lanes)
    if lane_pad:
        residual = residual[:, :F]
    residual = residual.reshape(x.shape).astype(x.dtype)
    loss = jnp.sum(ploss)                             # tiny final reduction in XLA
    return residual, loss


def pmdn_forward_ref(x, cfs, beta_mdn):
    B = x.shape[0]
    f = x.reshape(B, -1).astype(jnp.float32)
    f_r = jnp.dot(cfs[:, 1:].astype(jnp.float32),
                  beta_mdn[1:].astype(jnp.float32))
    r = f - f_r
    return r.reshape(x.shape), jnp.sum(r * r)


if __name__ == "__main__":
    key = jax.random.PRNGKey(0)

    # (B, C, H, W, num_metadata):
    #   1) module's suggested shape: F=1024 -> single chunk, exact tiling
    #   2) F=4608 -> 36 rows, 5 chunks, ragged last tile (in-kernel loss mask)
    #   3) F=1620 -> lane remainder (F % 128 != 0) + ragged last tile
    cases = [
        (2, 4, 16, 16, 4),
        (2, 8, 24, 24, 4),
        (2, 5, 18, 18, 4),
    ]

    for (B, C, H, W, M) in cases:
        key, kx, kc, kb = jax.random.split(key, 4)
        x = jax.random.normal(kx, (B, C, H, W), dtype=jnp.float32)
        cfs = jax.random.normal(kc, (B, M), dtype=jnp.float32)
        # Module inits beta_mdn to zeros; use small non-zero values so the
        # MAC path is actually exercised (synthetic test, no checkpoint).
        beta_mdn = 0.1 * jax.random.normal(kb, (M, C * H * W),
                                           dtype=jnp.float32)

        cfs_eff, beta_eff = pmdn_prepare_params(cfs, beta_mdn)
        residual, loss = pmdn_forward(x, cfs_eff, beta_eff)
        residual, loss = jax.block_until_ready((residual, loss))

        res_ref, loss_ref = pmdn_forward_ref(x, cfs, beta_mdn)
        assert residual.shape == x.shape
        assert jnp.allclose(residual, res_ref, atol=1e-5, rtol=1e-5), (B, C, H, W)
        assert jnp.allclose(loss, loss_ref, atol=1e-2, rtol=1e-4), (B, C, H, W)

    print("KERNEL_OK")
</pallas_src>

<mosaic_0001>
module attributes {stable_mosaic.version = 11 : i64} {
  func.func @_pmdn_kernel(%arg0: i32, %arg1: memref<2x3xf32, #tpu.memory_space<smem>>, %arg2: memref<2x8x128xf32, #tpu.memory_space<vmem>>, %arg3: memref<3x8x128xf32, #tpu.memory_space<vmem>>, %arg4: memref<2x8x128xf32, #tpu.memory_space<vmem>>, %arg5: memref<1x8x128xf32, #tpu.memory_space<vmem>>) attributes {dimension_semantics = [#tpu.dimension_semantics<parallel>], iteration_bounds = array<i64: 1>, scalar_prefetch = 1 : i64, scratch_operands = 0 : i64, tpu.core_type = #tpu.core_type<tc>, window_params = [{transform_indices = @transform_0, window_bounds = array<i64: 2, 8, 128>}, {transform_indices = @transform_1, window_bounds = array<i64: 3, 8, 128>}, {transform_indices = @transform_2, window_bounds = array<i64: 2, 8, 128>}, {transform_indices = @transform_3, window_bounds = array<i64: 1, 8, 128>}]} {
    %c0 = arith.constant 0 : index
    %c0_0 = arith.constant 0 : index
    %c0_1 = arith.constant 0 : index
    %0 = vector.load %arg3[%c0, %c0_0, %c0_1] : memref<3x8x128xf32, #tpu.memory_space<vmem>>, vector<1x8x128xf32>
    %1 = vector.shape_cast %0 : vector<1x8x128xf32> to vector<8x128xf32>
    %c1 = arith.constant 1 : index
    %c0_2 = arith.constant 0 : index
    %c0_3 = arith.constant 0 : index
    %2 = vector.load %arg3[%c1, %c0_2, %c0_3] : memref<3x8x128xf32, #tpu.memory_space<vmem>>, vector<1x8x128xf32>
    %3 = vector.shape_cast %2 : vector<1x8x128xf32> to vector<8x128xf32>
    %c2 = arith.constant 2 : index
    %c0_4 = arith.constant 0 : index
    %c0_5 = arith.constant 0 : index
    %4 = vector.load %arg3[%c2, %c0_4, %c0_5] : memref<3x8x128xf32, #tpu.memory_space<vmem>>, vector<1x8x128xf32>
    %5 = vector.shape_cast %4 : vector<1x8x128xf32> to vector<8x128xf32>
    %cst = arith.constant 0.000000e+00 : f32
    %6 = vector.broadcast %cst : f32 to vector<8x128xf32>
    %c0_6 = arith.constant 0 : index
    %c0_7 = arith.constant 0 : index
    %7 = memref.load %arg1[%c0_6, %c0_7] : memref<2x3xf32, #tpu.memory_space<smem>>
    %8 = vector.broadcast %7 : f32 to vector<8x128xf32>
    %9 = arith.mulf %8, %1 : vector<8x128xf32>
    %c0_8 = arith.constant 0 : index
    %c1_9 = arith.constant 1 : index
    %10 = memref.load %arg1[%c0_8, %c1_9] : memref<2x3xf32, #tpu.memory_space<smem>>
    %11 = vector.broadcast %10 : f32 to vector<8x128xf32>
    %12 = arith.mulf %11, %3 : vector<8x128xf32>
    %13 = arith.addf %9, %12 : vector<8x128xf32>
    %c0_10 = arith.constant 0 : index
    %c2_11 = arith.constant 2 : index
    %14 = memref.load %arg1[%c0_10, %c2_11] : memref<2x3xf32, #tpu.memory_space<smem>>
    %15 = vector.broadcast %14 : f32 to vector<8x128xf32>
    %16 = arith.mulf %15, %5 : vector<8x128xf32>
    %17 = arith.addf %13, %16 : vector<8x128xf32>
    %c0_12 = arith.constant 0 : index
    %c0_13 = arith.constant 0 : index
    %c0_14 = arith.constant 0 : index
    %18 = vector.load %arg2[%c0_12, %c0_13, %c0_14] : memref<2x8x128xf32, #tpu.memory_space<vmem>>, vector<1x8x128xf32>
    %19 = vector.shape_cast %18 : vector<1x8x128xf32> to vector<8x128xf32>
    %20 = arith.subf %19, %17 : vector<8x128xf32>
    %c0_15 = arith.constant 0 : index
    %c0_16 = arith.constant 0 : index
    %c0_17 = arith.constant 0 : index
    %21 = vector.load %arg4[%c0_15, %c0_16, %c0_17] : memref<2x8x128xf32, #tpu.memory_space<vmem>>, vector<1x8x128xf32>
    %22 = vector.shape_cast %21 : vector<1x8x128xf32> to vector<8x128xf32>
    %23 = vector.shape_cast %20 : vector<8x128xf32> to vector<1x8x128xf32>
    tpu.vector_store %arg4[%c0_15, %c0_16, %c0_17], %23 {strides = array<i32>} : memref<2x8x128xf32, #tpu.memory_space<vmem>>, vector<1x8x128xf32>,
    %24 = arith.mulf %20, %20 : vector<8x128xf32>
    %25 = vector.shape_cast %24 : vector<8x128xf32> to vector<1x8x128xf32>
    %cst_18 = arith.constant dense<0.000000e+00> : vector<8x128xf32>
    %26 = vector.multi_reduction <add>, %25, %cst_18 [0] : vector<1x8x128xf32> to vector<8x128xf32>
    %27 = arith.addf %6, %26 : vector<8x128xf32>
    %c1_19 = arith.constant 1 : index
    %c0_20 = arith.constant 0 : index
    %28 = memref.load %arg1[%c1_19, %c0_20] : memref<2x3xf32, #tpu.memory_space<smem>>
    %29 = vector.broadcast %28 : f32 to vector<8x128xf32>
    %30 = arith.mulf %29, %1 : vector<8x128xf32>
    %c1_21 = arith.constant 1 : index
    %c1_22 = arith.constant 1 : index
    %31 = memref.load %arg1[%c1_21, %c1_22] : memref<2x3xf32, #tpu.memory_space<smem>>
    %32 = vector.broadcast %31 : f32 to vector<8x128xf32>
    %33 = arith.mulf %32, %3 : vector<8x128xf32>
    %34 = arith.addf %30, %33 : vector<8x128xf32>
    %c1_23 = arith.constant 1 : index
    %c2_24 = arith.constant 2 : index
    %35 = memref.load %arg1[%c1_23, %c2_24] : memref<2x3xf32, #tpu.memory_space<smem>>
    %36 = vector.broadcast %35 : f32 to vector<8x128xf32>
    %37 = arith.mulf %36, %5 : vector<8x128xf32>
    %38 = arith.addf %34, %37 : vector<8x128xf32>
    %c1_25 = arith.constant 1 : index
    %c0_26 = arith.constant 0 : index
    %c0_27 = arith.constant 0 : index
    %39 = vector.load %arg2[%c1_25, %c0_26, %c0_27] : memref<2x8x128xf32, #tpu.memory_space<vmem>>, vector<1x8x128xf32>
    %40 = vector.shape_cast %39 : vector<1x8x128xf32> to vector<8x128xf32>
    %41 = arith.subf %40, %38 : vector<8x128xf32>
    %c1_28 = arith.constant 1 : index
    %c0_29 = arith.constant 0 : index
    %c0_30 = arith.constant 0 : index
    %42 = vector.load %arg4[%c1_28, %c0_29, %c0_30] : memref<2x8x128xf32, #tpu.memory_space<vmem>>, vector<1x8x128xf32>
    %43 = vector.shape_cast %42 : vector<1x8x128xf32> to vector<8x128xf32>
    %44 = vector.shape_cast %41 : vector<8x128xf32> to vector<1x8x128xf32>
    tpu.vector_store %arg4[%c1_28, %c0_29, %c0_30], %44 {strides = array<i32>} : memref<2x8x128xf32, #tpu.memory_space<vmem>>, vector<1x8x128xf32>,
    %45 = arith.mulf %41, %41 : vector<8x128xf32>
    %46 = vector.shape_cast %45 : vector<8x128xf32> to vector<1x8x128xf32>
    %cst_31 = arith.constant dense<0.000000e+00> : vector<8x128xf32>
    %47 = vector.multi_reduction <add>, %46, %cst_31 [0] : vector<1x8x128xf32> to vector<8x128xf32>
    %48 = arith.addf %27, %47 : vector<8x128xf32>
    %49 = vector.shape_cast %48 : vector<8x128xf32> to vector<1x8x128xf32>
    %c0_32 = arith.constant 0 : index
    %c0_33 = arith.constant 0 : index
    %c0_34 = arith.constant 0 : index
    %50 = vector.load %arg5[%c0_32, %c0_33, %c0_34] : memref<1x8x128xf32, #tpu.memory_space<vmem>>, vector<1x8x128xf32>
    tpu.vector_store %arg5[%c0_32, %c0_33, %c0_34], %49 {strides = array<i32>} : memref<1x8x128xf32, #tpu.memory_space<vmem>>, vector<1x8x128xf32>,
    return
  }
  func.func @transform_0(%arg0: i32, %arg1: memref<2x3xf32, #tpu.memory_space<smem>>) -> (i32, i32, i32) {
    %c0_i32 = arith.constant 0 : i32
    %c0_i32_0 = arith.constant 0 : i32
    %c0_i32_1 = arith.constant 0 : i32
    return %c0_i32, %arg0, %c0_i32_0 : i32, i32, i32
  }
  func.func @transform_1(%arg0: i32, %arg1: memref<2x3xf32, #tpu.memory_space<smem>>) -> (i32, i32, i32) {
    %c0_i32 = arith.constant 0 : i32
    %c0_i32_0 = arith.constant 0 : i32
    %c0_i32_1 = arith.constant 0 : i32
    return %c0_i32, %arg0, %c0_i32_0 : i32, i32, i32
  }
  func.func @transform_2(%arg0: i32, %arg1: memref<2x3xf32, #tpu.memory_space<smem>>) -> (i32, i32, i32) {
    %c0_i32 = arith.constant 0 : i32
    %c0_i32_0 = arith.constant 0 : i32
    %c0_i32_1 = arith.constant 0 : i32
    return %c0_i32, %arg0, %c0_i32_0 : i32, i32, i32
  }
  func.func @transform_3(%arg0: i32, %arg1: memref<2x3xf32, #tpu.memory_space<smem>>) -> (i32, i32, i32) {
    %c0_i32 = arith.constant 0 : i32
    %c0_i32_0 = arith.constant 0 : i32
    %c0_i32_1 = arith.constant 0 : i32
    return %arg0, %c0_i32, %c0_i32_0 : i32, i32, i32
  }
}

</mosaic_0001>

<bundles_post_ra>
// kernel: tpu_custom_call.1
= control target key start
LH: loop header
LB: loop body
LE: loop exit
PB: predicated region body
PF: predicated region fallthrough
CT: control target
= control target key end

     0   :  { %s232_s15 = smov [#allocation3]   ;;  %s288_s0 = inlined_call_operand.hbm [shape: f32[2,3], index: 0, kind: input, shape index: {}]   ;;  %s289_s1 = inlined_call_operand.hbm [shape: f32[2,8,128], index: 1, kind: input, shape index: {}]   ;;  %s290_s2 = inlined_call_operand.hbm [shape: f32[3,8,128], index: 2, kind: input, shape index: {}]   ;;  %s291_s3 = inlined_call_operand.hbm [shape: f32[2,8,128], index: 3, kind: output, shape index: {0}]   ;;  %s292_s4 = inlined_call_operand.hbm [shape: f32[1,8,128], index: 4, kind: output, shape index: {1}]  }
   0x1   :  { %11 = dma.hbm_to_smem %s288_s0, 32, %s232_s15, [#allocation2] }
   0x2   :  { %222 = dma.done.wait [#allocation2], 32 }
   0x3   :  { %223 = vsyncadd [#allocation2], 4294967264 }
   0x4   :  { %13 = sfence }
   0x5   :  { %14 = vsyncpa [#allocation5], 0 }
   0x6   :  { %15 = vsyncpa [#allocation8], 0 }
   0x7   :  { %16 = vsyncpa [#allocation6], 0 }
   0x8   :  { %17 = vsyncpa [#allocation11], 0  ;;  %s233_s18 = smov [#allocation4]  }
   0x9   :  { %s23_s19 = sshll.u32 %s233_s18, 4  ;;  %s24_s19 = int_to_ptr.vmem [resolvable:$true] %s23_s19 }
   0xa   :  { %s150_s20 = scalar_lea.vmem %s24_s19, 256  ;;  %p155_p1 = scmp.lt.s32.totalorder %s24_s19, %s24_s19 }
   0xb   :  { %p151_p0 = scmp.ne.s32.totalorder %s24_s19, %s150_s20  ;;  %p156_p2 = scmp.lt.s32.totalorder %s150_s20, %s150_s20 }
   0xd   :  { %p157_p3 = por %p156_p2, %p155_p1 }
   0xf   :  { %p158_p4 = pnand %p157_p3, %p151_p0 }
  0x11   :  { %161 = shalt.err (!%p158_p4)
}
  0x12   :  { %s234_s21 = smov 128   ;;  %s235_s22 = smov 8  }
  0x13   :  { %29 = dma.hbm_to_vmem [thread:$0]  %s289_s1, 256, %s24_s19, [#allocation5], %s234_s21, %s234_s21, %s235_s22  }
  0x14   :  { %s236_s24 = smov [#allocation7]  }
  0x15   :  { %s35_s25 = sshll.u32 %s236_s24, 4  ;;  %s36_s25 = int_to_ptr.vmem [resolvable:$true] %s35_s25 }
  0x16   :  { %s170_s26 = scalar_lea.vmem %s36_s25, 384  ;;  %p175_p6 = scmp.lt.s32.totalorder %s36_s25, %s36_s25 }
  0x17   :  { %p171_p5 = scmp.ne.s32.totalorder %s36_s25, %s170_s26  ;;  %p176_p7 = scmp.lt.s32.totalorder %s170_s26, %s170_s26 }
  0x19   :  { %p177_p8 = por %p176_p7, %p175_p6 }
  0x1b   :  { %p178_p9 = pnand %p177_p8, %p171_p5 }
  0x1d   :  { %181 = shalt.err (!%p178_p9)
}
  0x1e   :  { %41 = dma.hbm_to_vmem [thread:$0]  %s290_s2, 384, %s36_s25, [#allocation8], %s234_s21, %s234_s21, %s235_s22  }
  0x1f   :  { %224 = dma.done.wait [#allocation5], 256  }
  0x20   :  { %225 = vsyncadd [#allocation5], 4294967040 }
  0x21   :  { %226 = dma.done.wait [#allocation8], 384  }
  0x22   :  { %227 = vsyncadd [#allocation8], 4294966912  ;;  %s53_s1 = sld [smem:[#allocation3]]  ;;  %v48_v0 = vld [vmem:[#allocation7] sm:$0xff]  ;;  %v50_v1 = vld [vmem:[#allocation7 + $0x8] sm:$0xff]  ;;  %s237_s2 = smov [#allocation9]  }
  0x23   :  { %s122_s29 = sld [smem:[#allocation3 + $0x1]]  ;;  %v52_v2 = vld [vmem:[#allocation7 + $0x10] sm:$0xff]  ;;  %v82_v20 = vld [vmem:[#allocation4 + $0x8] sm:$0xff]  ;;  %s95_s8 = sshll.u32 %s237_s2, 4  ;;  %s96_s8 = int_to_ptr.vmem [resolvable:$true] %s95_s8 }
  0x24   :  { %s123_s30 = sld [smem:[#allocation3 + $0x2]]  ;;  %v64_v13 = vld [vmem:[#allocation4] sm:$0xff]  ;;  %s238_s9 = smov [#allocation10]  }
  0x25   :  { %s124_s5 = sld [smem:[#allocation3 + $0x80]]  ;;  %s108_s10 = sshll.u32 %s238_s9, 4  ;;  %s109_s10 = int_to_ptr.vmem [resolvable:$true] %s108_s10 }
  0x26   :  { %s125_s6 = sld [smem:[#allocation3 + $0x81]]  ;;  %s182_s11 = scalar_lea.vmem %s96_s8, 256 }
  0x27   :  { %s126_s7 = sld [smem:[#allocation3 + $0x82]]  ;;  %p183_p10 = scmp.ne.s32.totalorder %s96_s8, %s182_s11 }
  0x28   :  { %v54_v3 = vstv %s53_s1  ;;  %p187_p11 = scmp.lt.s32.totalorder %s96_s8, %s96_s8  ;;  %p188_p12 = scmp.lt.s32.totalorder %s182_s11, %s182_s11 }
  0x29   :  { %v55_v4 = vmul.f32 %v54_v3, %v48_v0  ;;  %v57_v5 = vstv %s122_s29 }
  0x2a   :  { %v58_v6 = vmul.f32 %v57_v5, %v50_v1  ;;  %v61_v7 = vstv %s123_s30  ;;  %p189_p13 = por %p188_p12, %p187_p11 }
  0x2b   :  { %v62_v8 = vmul.f32 %v61_v7, %v52_v2  ;;  %v71_v9 = vstv %s124_s5 }
  0x2c   :  { %v59_v10 = vadd.f32 %v58_v6, %v55_v4  ;;  %v72_v11 = vmul.f32 %v71_v9, %v48_v0  ;;  %v74_v12 = vstv %s125_s6  ;;  %p190_p0 = pnand %p189_p13, %p183_p10 }
  0x2d   :  { %v75_v14 = vmul.f32 %v74_v12, %v50_v1  ;;  %v78_v15 = vstv %s126_s7 }
  0x2e   :  { %v63_v16 = vadd.f32 %v62_v8, %v59_v10  ;;  %v79_v17 = vmul.f32 %v78_v15, %v52_v2 }
  0x2f   :  { %v76_v18 = vadd.f32 %v75_v14, %v72_v11 }
  0x30   :  { %v65_v19 = vsub.f32 %v64_v13, %v63_v16 }
  0x31   :  { %v80_v21 = vadd.f32 %v79_v17, %v76_v18 }
  0x32   :  { %66 = vst [vmem:[#allocation9] sm:$0xff] %v65_v19  ;;  %v67_v23 = vmul.f32 %v65_v19, %v65_v19 }
  0x33   :  { %v83_v22 = vsub.f32 %v82_v20, %v80_v21 }
  0x35   :  { %85 = vst [vmem:[#allocation9 + $0x8] sm:$0xff] %v83_v22  ;;  %v86_v24 = vmul.f32 %v83_v22, %v83_v22 }
  0x36   :  { %193 = shalt.err (!%p190_p0)
}
  0x37   :  { %101 = dma.vmem_to_hbm [thread:$0]  %s96_s8, 256, %s291_s3, [#allocation6], %s234_s21, %s234_s21, %s235_s22   ;;  %v88_v25 = vadd.f32 %v86_v24, %v67_v23 }
  0x38   :  { %s202_s14 = scalar_lea.vmem %s109_s10, 128  ;;  %p207_p2 = scmp.lt.s32.totalorder %s109_s10, %s109_s10 }
  0x39   :  { %89 = vst [vmem:[#allocation10] sm:$0xff] %v88_v25  ;;  %p203_p1 = scmp.ne.s32.totalorder %s109_s10, %s202_s14  ;;  %p208_p3 = scmp.lt.s32.totalorder %s202_s14, %s202_s14 }
  0x3b   :  { %p209_p4 = por %p208_p3, %p207_p2 }
  0x3d   :  { %p210_p5 = pnand %p209_p4, %p203_p1 }
  0x3f   :  { %213 = shalt.err (!%p210_p5)
}
  0x40   :  { %111 = dma.vmem_to_hbm [thread:$0]  %s109_s10, 128, %s292_s4, [#allocation11]  }
  0x41   :  { %228 = dma.done.wait [#allocation6], 256  }
  0x42   :  { %229 = vsyncadd [#allocation6], 4294967040 }
  0x43   :  { %230 = dma.done.wait [#allocation11], 128  }
  0x44   :  { %231 = vsyncadd [#allocation11], 4294967168 }
  0x45   :  { %118 = vsyncpa [#allocation5], 1 }
  0x46   :  { %119 = vsyncpa [#allocation8], 1 }
  0x47   :  { %120 = vsyncpa [#allocation6], 1 }
  0x48   :  { %121 = vsyncpa [#allocation11], 1 }

</bundles_post_ra>
